<compile_context>
chip_gen: v7x
topology: tpu7x:2x2x1
jax: 0.10.0
libtpu: 0.0.40
codegen_flags: <defaults>
</compile_context>

<pallas_src>
import jax
import jax.numpy as jnp
from jax.experimental import pallas as pl
from jax.experimental.pallas import tpu as pltpu


def _round_up(x, m):
    return ((x + m - 1) // m) * m


def _cdiv(a, b):
    return -(-a // b)


# --------------------------------------------------------------------------
# General path: per-batch-tile fused forward.  Output y = [val+adv | val].
# --------------------------------------------------------------------------
def fwd_kernel(x_ref, w1_ref, b1_ref, w2_ref, b2_ref, y_ref):
    # fused first layer  [h_v | h_a]  -> one MXU op, f32 accumulate
    h = jnp.dot(x_ref[...], w1_ref[...], preferred_element_type=jnp.float32)
    h = jnp.maximum(h + b1_ref[...], 0.0)                       # (tb, 2H) f32
    # fused second layer: columns 0..A-1 already hold val+adv_j, col A = val
    y_ref[...] = (jnp.dot(h.astype(w2_ref.dtype), w2_ref[...],
                          preferred_element_type=jnp.float32)
                  + b2_ref[...])                                 # (tb, A+1) f32


# --------------------------------------------------------------------------
# Single-tile fast path: compute the global advantage mean in-kernel and
# write q directly (no intermediate writeback, no XLA epilogue).
# --------------------------------------------------------------------------
def make_fastpath_kernel(tb, n_actions, batch_logical):
    inv_count = 1.0 / float(batch_logical * n_actions)

    def kernel(x_ref, w1_ref, b1_ref, w2_ref, b2_ref, q_ref):
        h = jnp.dot(x_ref[...], w1_ref[...], preferred_element_type=jnp.float32)
        h = jnp.maximum(h + b1_ref[...], 0.0)
        y = (jnp.dot(h.astype(w2_ref.dtype), w2_ref[...],
                     preferred_element_type=jnp.float32)
             + b2_ref[...])                                      # (tb, A+1)

        raw = y[:, :n_actions]                                   # val + adv
        valc = y[:, n_actions:n_actions + 1]                     # val

        # mask padded batch rows out of the global mean
        rmask = jax.lax.broadcasted_iota(jnp.int32, (tb, n_actions), 0) < batch_logical
        vmask = jax.lax.broadcasted_iota(jnp.int32, (tb, 1), 0) < batch_logical
        adv_sum = (jnp.sum(jnp.where(rmask, raw, 0.0))
                   - n_actions * jnp.sum(jnp.where(vmask, valc, 0.0)))
        mean = adv_sum * inv_count

        q_ref[...] = raw - mean                                  # padded rows sliced off later

    return kernel


# --------------------------------------------------------------------------
# Wrapper
# --------------------------------------------------------------------------
def dueling_forward(x, fused_params, *, tb=None):
    """x: (B, F) f32.  fused_params = (w1, b1, w2, b2) from fuse_params()."""
    w1, b1, w2, b2 = fused_params
    B, F = x.shape
    H2 = w1.shape[1]
    A1 = w2.shape[1]          # A + 1
    A = A1 - 1
    compute_dtype = w1.dtype

    if tb is None:
        tb = 1024 if F <= 256 else 512   # mem/overhead-bound: big tiles

    # ---- tile the batch (multiple of 8; >=2 balanced blocks when B > tb) ----
    if B <= tb:
        tb_eff = _round_up(B, 8)
        nblocks = 1
    else:
        nblocks = _cdiv(B, tb)
        tb_eff = _round_up(_cdiv(B, nblocks), 8)
        nblocks = _cdiv(B, tb_eff)
    b_pad = nblocks * tb_eff

    x = x.astype(compute_dtype)
    if b_pad != B:
        x = jnp.pad(x, ((0, b_pad - B), (0, 0)))

    # resident (untiled) weights; constant index_map so no per-step re-DMA.
    # (On v7x one could add pipeline_mode=pl.Buffered(1) to halve their VMEM.)
    full = lambda arr: pl.BlockSpec(arr.shape, lambda i: (0, 0))

    itemsize = jnp.dtype(compute_dtype).itemsize
    est = (2 * tb_eff * F * itemsize            # x (double buffered)
           + 2 * tb_eff * A1 * 4                # y / q (double buffered)
           + 2 * (F * H2 + H2 * A1) * itemsize  # fused weights (worst case 2x)
           + 2 * (H2 + A1) * 4                  # biases
           + 2 * tb_eff * H2 * 4)               # f32 hidden working set
    vmem_limit = int(min(64 * 1024 * 1024, max(32 * 1024 * 1024, 2 * est)))
    cparams = pltpu.CompilerParams(dimension_semantics=("parallel",),
                                   vmem_limit_bytes=vmem_limit)

    if nblocks == 1:
        # -------- fast path: one kernel, q written directly --------
        q = pl.pallas_call(
            make_fastpath_kernel(tb_eff, A, B),
            grid=(1,),
            in_specs=[pl.BlockSpec((tb_eff, F), lambda i: (i, 0)),
                      full(w1), full(b1), full(w2), full(b2)],
            out_specs=pl.BlockSpec((tb_eff, A), lambda i: (i, 0)),
            out_shape=jax.ShapeDtypeStruct((b_pad, A), jnp.float32),
            compiler_params=cparams,
        )(x, w1, b1, w2, b2)
        return q[:B]

    # -------- general path: one kernel producing [val+adv | val] --------
    y = pl.pallas_call(
        fwd_kernel,
        grid=(nblocks,),
        in_specs=[pl.BlockSpec((tb_eff, F), lambda i: (i, 0)),
                  full(w1), full(b1), full(w2), full(b2)],
        out_specs=pl.BlockSpec((tb_eff, A1), lambda i: (i, 0)),
        out_shape=jax.ShapeDtypeStruct((b_pad, A1), jnp.float32),
        compiler_params=cparams,
    )(x, w1, b1, w2, b2)

    # tiny XLA epilogue (fuses): global mean of advantages + subtract + slice
    y = y[:B]
    raw = y[:, :A]                        # val + adv
    val = y[:, A:]                        # val
    mean = (jnp.sum(raw) - A * jnp.sum(val)) / float(B * A)
    return raw - mean


# --------------------------------------------------------------------------
# Parameter construction
# --------------------------------------------------------------------------
def init_params(key, input_shape, hidden_size, n_actions):
    """Unfused params, weights stored (in_features, out_features), f32."""
    keys = jax.random.split(key, 8)

    def linear(kw, kb, fan_in, fan_out):
        bound = 1.0 / jnp.sqrt(jnp.float32(fan_in))
        w = jax.random.uniform(kw, (fan_in, fan_out), jnp.float32, -bound, bound)
        b = jax.random.uniform(kb, (1, fan_out), jnp.float32, -bound, bound)
        return w, b

    w1v, b1v = linear(keys[0], keys[1], input_shape, hidden_size)
    w2v, b2v = linear(keys[2], keys[3], hidden_size, 1)
    w1a, b1a = linear(keys[4], keys[5], input_shape, hidden_size)
    w2a, b2a = linear(keys[6], keys[7], hidden_size, n_actions)
    return (w1v, b1v, w2v, b2v, w1a, b1a, w2a, b2a)


def fuse_params(w1v, b1v, w2v, b2v, w1a, b1a, w2a, b2a,
                compute_dtype=jnp.bfloat16):
    """Build fused weights ONCE.  Second layer has the value head folded into
    every advantage column so the MXU directly produces val + adv."""
    H = w1v.shape[1]
    A = w2a.shape[1]
    w1 = jnp.concatenate([w1v, w1a], axis=1)                      # (F, 2H)
    b1 = jnp.concatenate([b1v, b1a], axis=1)                      # (1, 2H)
    # column j < A : [w2v ; w2a[:, j]]  ->  y_j = val + adv_j
    # column A     : [w2v ; 0        ]  ->  y_A = val
    top = jnp.broadcast_to(w2v, (H, A + 1))
    bot = jnp.concatenate([w2a, jnp.zeros((H, 1), w2a.dtype)], axis=1)
    w2 = jnp.concatenate([top, bot], axis=0)                      # (2H, A+1)
    b2 = jnp.concatenate([b2a + b2v, b2v], axis=1)                # (1, A+1)
    # weights in compute dtype (bf16 by default); biases stay f32 since the
    # bias-add / ReLU run on the f32 MXU accumulator.
    return (w1.astype(compute_dtype), b1.astype(jnp.float32),
            w2.astype(compute_dtype), b2.astype(jnp.float32))


def reference_forward(x, params, compute_dtype=jnp.float32):
    """Plain-JAX reference (unfused).  `compute_dtype` mirrors the kernel's
    matmul-input precision (f32 accumulation either way)."""
    (w1v, b1v, w2v, b2v, w1a, b1a, w2a, b2a) = params
    c = lambda a: a.astype(compute_dtype)
    h_v = jnp.maximum(jnp.dot(c(x), c(w1v), preferred_element_type=jnp.float32) + b1v, 0.0)
    val = jnp.dot(c(h_v), c(w2v), preferred_element_type=jnp.float32) + b2v
    h_a = jnp.maximum(jnp.dot(c(x), c(w1a), preferred_element_type=jnp.float32) + b1a, 0.0)
    adv = jnp.dot(c(h_a), c(w2a), preferred_element_type=jnp.float32) + b2a
    return val + (adv - jnp.mean(adv))


if __name__ == "__main__":
    batch = 20            # not a multiple of 8 -> exercises padding/masking
    input_shape = 16
    hidden_size = 32
    n_actions = 8

    key = jax.random.PRNGKey(0)
    k_x, k_p = jax.random.split(key)

    x = jax.random.normal(k_x, (batch, input_shape), dtype=jnp.float32)
    params = init_params(k_p, input_shape, hidden_size, n_actions)

    # 1) single-tile fast path, f32 compute (strict check)
    fused_f32 = fuse_params(*params, compute_dtype=jnp.float32)
    q_fast = jax.block_until_ready(dueling_forward(x, fused_f32))
    ref_f32 = reference_forward(x, params, compute_dtype=jnp.float32)
    assert q_fast.shape == (batch, n_actions)
    assert jnp.allclose(q_fast, ref_f32, atol=1e-4, rtol=1e-4), "fast path (f32) mismatch"

    # 2) multi-block general path, f32 compute (3 batch tiles of 8 rows)
    q_multi = jax.block_until_ready(dueling_forward(x, fused_f32, tb=8))
    assert q_multi.shape == (batch, n_actions)
    assert jnp.allclose(q_multi, ref_f32, atol=1e-4, rtol=1e-4), "general path (f32) mismatch"

    # 3) multi-block general path, default bf16 compute (vs bf16-matched ref)
    fused_bf16 = fuse_params(*params)          # bf16 weights by default
    q_bf16 = jax.block_until_ready(dueling_forward(x, fused_bf16, tb=8))
    ref_bf16 = reference_forward(x, params, compute_dtype=jnp.bfloat16)
    assert q_bf16.shape == (batch, n_actions)
    assert jnp.allclose(q_bf16, ref_bf16, atol=5e-3, rtol=5e-2), "general path (bf16) mismatch"

    print("KERNEL_OK")
</pallas_src>

<mosaic_0001>
module attributes {stable_mosaic.version = 11 : i64} {
  func.func @kernel(%arg0: i32, %arg1: memref<24x16xf32, #tpu.memory_space<vmem>>, %arg2: memref<16x64xf32, #tpu.memory_space<vmem>>, %arg3: memref<1x64xf32, #tpu.memory_space<vmem>>, %arg4: memref<64x9xf32, #tpu.memory_space<vmem>>, %arg5: memref<1x9xf32, #tpu.memory_space<vmem>>, %arg6: memref<24x8xf32, #tpu.memory_space<vmem>>) attributes {dimension_semantics = [#tpu.dimension_semantics<parallel>], iteration_bounds = array<i64: 1>, scalar_prefetch = 0 : i64, scratch_operands = 0 : i64, tpu.core_type = #tpu.core_type<tc>, window_params = [{transform_indices = @transform_0, window_bounds = array<i64: 24, 16>}, {pipeline_mode = #tpu.pipeline_mode<synchronous>, transform_indices = @transform_1, window_bounds = array<i64: 16, 64>}, {pipeline_mode = #tpu.pipeline_mode<synchronous>, transform_indices = @transform_2, window_bounds = array<i64: 1, 64>}, {pipeline_mode = #tpu.pipeline_mode<synchronous>, transform_indices = @transform_3, window_bounds = array<i64: 64, 9>}, {pipeline_mode = #tpu.pipeline_mode<synchronous>, transform_indices = @transform_4, window_bounds = array<i64: 1, 9>}, {transform_indices = @transform_5, window_bounds = array<i64: 24, 8>}]} {
    %c0 = arith.constant 0 : index
    %c0_0 = arith.constant 0 : index
    %0 = vector.load %arg1[%c0, %c0_0] : memref<24x16xf32, #tpu.memory_space<vmem>>, vector<24x16xf32>
    %c0_1 = arith.constant 0 : index
    %c0_2 = arith.constant 0 : index
    %1 = vector.load %arg2[%c0_1, %c0_2] : memref<16x64xf32, #tpu.memory_space<vmem>>, vector<16x64xf32>
    %cst = arith.constant dense<0.000000e+00> : vector<24x64xf32>
    %2 = tpu.matmul %0, %1, %cst {dimension_numbers = #tpu.dot_dimension_numbers<[1], [0], [0], [1], [0, 0, 1, 1], [], []>} : vector<24x16xf32>, vector<16x64xf32>, vector<24x64xf32> -> vector<24x64xf32>
    %c0_3 = arith.constant 0 : index
    %c0_4 = arith.constant 0 : index
    %3 = vector.load %arg3[%c0_3, %c0_4] : memref<1x64xf32, #tpu.memory_space<vmem>>, vector<1x64xf32>
    %4 = vector.broadcast %3 : vector<1x64xf32> to vector<24x64xf32>
    %5 = arith.addf %2, %4 : vector<24x64xf32>
    %cst_5 = arith.constant 0.000000e+00 : f32
    %6 = vector.broadcast %cst_5 : f32 to vector<24x64xf32>
    %7 = arith.maximumf %5, %6 : vector<24x64xf32>
    %c0_6 = arith.constant 0 : index
    %c0_7 = arith.constant 0 : index
    %8 = vector.load %arg4[%c0_6, %c0_7] : memref<64x9xf32, #tpu.memory_space<vmem>>, vector<64x9xf32>
    %cst_8 = arith.constant dense<0.000000e+00> : vector<24x9xf32>
    %9 = tpu.matmul %7, %8, %cst_8 {dimension_numbers = #tpu.dot_dimension_numbers<[1], [0], [0], [1], [0, 0, 1, 1], [], []>} : vector<24x64xf32>, vector<64x9xf32>, vector<24x9xf32> -> vector<24x9xf32>
    %c0_9 = arith.constant 0 : index
    %c0_10 = arith.constant 0 : index
    %10 = vector.load %arg5[%c0_9, %c0_10] : memref<1x9xf32, #tpu.memory_space<vmem>>, vector<1x9xf32>
    %11 = vector.broadcast %10 : vector<1x9xf32> to vector<24x9xf32>
    %12 = arith.addf %9, %11 : vector<24x9xf32>
    %13 = vector.extract_strided_slice %12 {offsets = [0, 0], sizes = [24, 8], strides = [1, 1]} : vector<24x9xf32> to vector<24x8xf32>
    %14 = vector.extract_strided_slice %12 {offsets = [0, 8], sizes = [24, 1], strides = [1, 1]} : vector<24x9xf32> to vector<24x1xf32>
    %15 = tpu.iota {dimensions = array<i32: 0>} : vector<24x8xi32>
    %c20_i32 = arith.constant 20 : i32
    %16 = vector.broadcast %c20_i32 : i32 to vector<24x8xi32>
    %17 = arith.cmpi slt, %15, %16 : vector<24x8xi32>
    %18 = tpu.iota {dimensions = array<i32: 0>} : vector<24x1xi32>
    %c20_i32_11 = arith.constant 20 : i32
    %19 = vector.broadcast %c20_i32_11 : i32 to vector<24x1xi32>
    %20 = arith.cmpi slt, %18, %19 : vector<24x1xi32>
    %cst_12 = arith.constant 0.000000e+00 : f32
    %21 = vector.broadcast %cst_12 : f32 to vector<24x8xf32>
    %22 = arith.select %17, %13, %21 : vector<24x8xi1>, vector<24x8xf32>
    %23 = vector.shape_cast %22 : vector<24x8xf32> to vector<1x24x8xf32>
    %cst_13 = arith.constant dense<0.000000e+00> : vector<1xf32>
    %24 = vector.multi_reduction <add>, %23, %cst_13 [1, 2] : vector<1x24x8xf32> to vector<1xf32>
    %25 = vector.shape_cast %24 : vector<1xf32> to vector<1x1x1xf32>
    %26 = vector.extract %25[0, 0, 0] : f32 from vector<1x1x1xf32>
    %cst_14 = arith.constant 0.000000e+00 : f32
    %27 = vector.broadcast %cst_14 : f32 to vector<24x1xf32>
    %28 = arith.select %20, %14, %27 : vector<24x1xi1>, vector<24x1xf32>
    %29 = vector.shape_cast %28 : vector<24x1xf32> to vector<1x24x1xf32>
    %cst_15 = arith.constant dense<0.000000e+00> : vector<1xf32>
    %30 = vector.multi_reduction <add>, %29, %cst_15 [1, 2] : vector<1x24x1xf32> to vector<1xf32>
    %31 = vector.shape_cast %30 : vector<1xf32> to vector<1x1x1xf32>
    %32 = vector.extract %31[0, 0, 0] : f32 from vector<1x1x1xf32>
    %cst_16 = arith.constant 8.000000e+00 : f32
    %33 = arith.mulf %cst_16, %32 : f32
    %34 = arith.subf %26, %33 : f32
    %cst_17 = arith.constant 6.250000e-03 : f32
    %35 = arith.mulf %34, %cst_17 : f32
    %36 = vector.broadcast %35 : f32 to vector<24x8xf32>
    %37 = arith.subf %13, %36 : vector<24x8xf32>
    %c0_18 = arith.constant 0 : index
    %c0_19 = arith.constant 0 : index
    %38 = vector.load %arg6[%c0_18, %c0_19] : memref<24x8xf32, #tpu.memory_space<vmem>>, vector<24x8xf32>
    tpu.vector_store %arg6[%c0_18, %c0_19], %37 {strides = array<i32>} : memref<24x8xf32, #tpu.memory_space<vmem>>, vector<24x8xf32>,
    return
  }
  func.func @transform_0(%arg0: i32) -> (i32, i32) {
    %c0_i32 = arith.constant 0 : i32
    %c0_i32_0 = arith.constant 0 : i32
    return %arg0, %c0_i32 : i32, i32
  }
  func.func @transform_1(%arg0: i32) -> (i32, i32) {
    %c0_i32 = arith.constant 0 : i32
    %c0_i32_0 = arith.constant 0 : i32
    %c0_i32_1 = arith.constant 0 : i32
    return %c0_i32, %c0_i32_0 : i32, i32
  }
  func.func @transform_2(%arg0: i32) -> (i32, i32) {
    %c0_i32 = arith.constant 0 : i32
    %c0_i32_0 = arith.constant 0 : i32
    %c0_i32_1 = arith.constant 0 : i32
    return %c0_i32, %c0_i32_0 : i32, i32
  }
  func.func @transform_3(%arg0: i32) -> (i32, i32) {
    %c0_i32 = arith.constant 0 : i32
    %c0_i32_0 = arith.constant 0 : i32
    %c0_i32_1 = arith.constant 0 : i32
    return %c0_i32, %c0_i32_0 : i32, i32
  }
  func.func @transform_4(%arg0: i32) -> (i32, i32) {
    %c0_i32 = arith.constant 0 : i32
    %c0_i32_0 = arith.constant 0 : i32
    %c0_i32_1 = arith.constant 0 : i32
    return %c0_i32, %c0_i32_0 : i32, i32
  }
  func.func @transform_5(%arg0: i32) -> (i32, i32) {
    %c0_i32 = arith.constant 0 : i32
    %c0_i32_0 = arith.constant 0 : i32
    return %arg0, %c0_i32 : i32, i32
  }
}

</mosaic_0001>

<bundles_post_ra>
// kernel: tpu_custom_call.1
= control target key start
LH: loop header
LB: loop body
LE: loop exit
PB: predicated region body
PF: predicated region fallthrough
CT: control target
= control target key end

     0   :  { %v389_v0 = vmov 0.0|0.0   ;;  %vm390_vm0 = vmmov 0   ;;  %v391_v3 = vmov 0.0   ;;  %vm32_vm1 = vcmask 130048   ;;  %s392_s19 = smov 120   ;;  %s492_s1 = inlined_call_operand.vmem [shape: f32[16,64], index: 1, kind: input, shape index: {}]   ;;  %s493_s3 = inlined_call_operand.vmem [shape: f32[64,9], index: 3, kind: input, shape index: {}]   ;;  %s494_s0 = inlined_call_operand.vmem [shape: f32[24,16], index: 0, kind: input, shape index: {}]   ;;  %s495_s2 = inlined_call_operand.vmem [shape: f32[1,64], index: 2, kind: input, shape index: {}]   ;;  %s496_s4 = inlined_call_operand.vmem [shape: f32[1,9], index: 4, kind: input, shape index: {}]   ;;  %s497_s5 = inlined_call_operand.vmem [shape: f32[24,8], index: 5, kind: output, shape index: {}]  }
   0x1   :  { %358 = vmatprep.subr.bf16.mxu0 %v389_v0  ;;  %v23_v1 = vld [vmem:[%s492_s1] sm:$0xff]  ;;  %v24_v2 = vld [vmem:[%s492_s1 + $0x8] sm:$0xff]  ;;  %324 = vmatprep.mubr.msk.f32.mxu0 %vm390_vm0, %v391_v3  ;;  %v127_v9 = vld [vmem:[%s493_s3 + $0x10] sm:$0xff]  ;;  %vm140_vm2 = vcmask 523264   ;;  %v230_v33 = vlaneseq  ;;  %vm240_vm4 = vcmask 64512   ;;  %vm267_vm5 = vcmask 7168  }
   0x2   :  { %v359_v4 = vpack.c.bf16 %v24_v2, %v23_v1  ;;  %v125_v5 = vld [vmem:[%s493_s3] sm:$0xff]  ;;  %373 = vmatprep.subr.bf16.mxu1 %v389_v0  ;;  %352 = vmatprep.mubr.msk.f32.mxu1 %vm390_vm0, %v391_v3  ;;  %v126_v6 = vld [vmem:[%s493_s3 + $0x8] sm:$0xff]  ;;  %v128_v10 = vld [vmem:[%s493_s3 + $0x18] sm:$0xff] }
   0x3   :  { %v20_v7 = vld [vmem:[%s494_s0] sm:$0xff]  ;;  %v362_v8 = vpack.c.bf16 %v126_v6, %v125_v5  ;;  %v21_v11 = vld [vmem:[%s494_s0 + $0x8] sm:$0xff]  ;;  %v365_v12 = vpack.c.bf16 %v128_v10, %v127_v9  ;;  %v22_v15 = vld [vmem:[%s494_s0 + $0x10] sm:$0xff]  ;;  %v231_v36 = vshrl.u32 %v230_v33, 7 }
   0x4   :  { %360 = vmatpush3.bf16.msra.mxu0 %v359_v4  ;;  %v129_v13 = vld [vmem:[%s493_s3 + $0x20] sm:$0xff]  ;;  %v130_v14 = vld [vmem:[%s493_s3 + $0x28] sm:$0xff]  ;;  %v131_v17 = vld [vmem:[%s493_s3 + $0x30] sm:$0xff] }
   0x5   :  { %361 = vmatprep.subr.bf16.mxu0 %v389_v0  ;;  %377 = vmatpush3.bf16.msra.mxu1 %v362_v8  ;;  %v368_v16 = vpack.c.bf16 %v130_v14, %v129_v13  ;;  %v132_v18 = vld [vmem:[%s493_s3 + $0x38] sm:$0xff]  ;;  %v296_v20 = vld [vmem:[%s495_s2] ss:$0 sm:$0xff]  ;;  %v233_v40 = vadd.s32 16, %v231_v36 }
   0x6   :  { %374 = vmatprep.subr.bf16.mxu1 %v389_v0  ;;  %v371_v19 = vpack.c.bf16 %v132_v18, %v131_v17  ;;  %v300_v34 = vld [vmem:[%s496_s4] ss:$0 sm:$0xff] }
   0x7   :  { %325 = vmatmul.mubr.msk.f32.vlgmr.msra.gmra.mrb[0].mxu0 %vm32_vm1, %v20_v7  ;;  %vm236_vm3 = vcmp.lt.s32.totalorder %v233_v40, 20 }
   0x8   :  { %327 = vmatprep.mubr.msk.f32.mxu0 %vm390_vm0, %v391_v3  ;;  %363 = vmatpush3.bf16.msra.mxu0 %v362_v8 }
   0x9   :  { %364 = vmatprep.subr.bf16.mxu0 %v389_v0  ;;  %378 = vmatpush3.bf16.msra.mxu1 %v365_v12 }
   0xa   :  { %375 = vmatprep.subr.bf16.mxu1 %v389_v0 }
   0xb   :  { %328 = vmatmul.mubr.msk.f32.gmra.mrb[2].mxu0 %vm32_vm1, %v21_v11 }
   0xc   :  { %330 = vmatprep.mubr.msk.f32.mxu0 %vm390_vm0, %v391_v3  ;;  %366 = vmatpush3.bf16.msra.mxu0 %v365_v12 }
   0xd   :  { %367 = vmatprep.subr.bf16.mxu0 %v389_v0  ;;  %379 = vmatpush3.bf16.msra.mxu1 %v368_v16 }
   0xe   :  { %376 = vmatprep.subr.bf16.mxu1 %v389_v0 }
   0xf   :  { %331 = vmatmul.mubr.msk.f32.gmra.mrb[4].mxu0 %vm32_vm1, %v22_v15 }
  0x10   :  { %369 = vmatpush3.bf16.msra.mxu0 %v368_v16  ;;  %349 = vmatprep.mubr.msk.f32.mxu0 %vm390_vm0, %v391_v3 }
  0x11   :  { %370 = vmatprep.subr.bf16.mxu0 %v389_v0  ;;  %380 = vmatpush3.bf16.msra.mxu1 %v371_v19 }
  0x14   :  { %372 = vmatpush3.bf16.msra.mxu0 %v371_v19 }
  0xda   :  { %v108_v21 = vpop.f32.mrb[0].mxu0 }
  0xdb   :  { %v109_v22 = vadd.f32 %v296_v20, %v108_v21  ;;  %v326_v23 = vpop.f32.mrb[1].mxu0 }
  0xdd   :  { %v122_v24 = vmax.f32 %v109_v22, 0.0 }
  0xde   :  { %v113_v25 = vpop.f32.mrb[2].mxu0 }
  0xdf   :  { %v114_v26 = vadd.f32 %v296_v20, %v113_v25  ;;  %v329_v27 = vpop.f32.mrb[3].mxu0  ;;  %350 = vmatmul.mubr.msk.f32.vlgmr.msra.gmra.mrb[6].mxu0 %vm140_vm2, %v122_v24 }
  0xe1   :  { %v123_v28 = vmax.f32 %v114_v26, 0.0 }
  0xe2   :  { %v118_v29 = vpop.f32.mrb[4].mxu0 }
  0xe3   :  { %v119_v30 = vadd.f32 %v296_v20, %v118_v29  ;;  %v332_v31 = vpop.f32.mrb[5].mxu0  ;;  %353 = vmatmul.mubr.msk.f32.vlgmr.msra.gmra.mrb[0].mxu1 %vm140_vm2, %v123_v28 }
  0xe4   :  { %355 = vmatprep.mubr.msk.f32.mxu1 %vm390_vm0, %v391_v3 }
  0xe5   :  { %v124_v32 = vmax.f32 %v119_v30, 0.0 }
  0xe7   :  { %356 = vmatmul.mubr.msk.f32.gmra.mrb[2].mxu1 %vm140_vm2, %v124_v32 }
 0x1b2   :  { %v216_v35 = vpop.f32.mrb[6].mxu0 }
 0x1b3   :  { %v217_v37 = vadd.f32 %v300_v34, %v216_v35  ;;  %v351_v38 = vpop.f32.mrb[7].mxu0 }
 0x1b5   :  { %258 = vrot.lane.b32.xlu0 %v217_v37, %s392_s19  ;;  %v241_v49 = vsel %vm240_vm4, %v217_v37, 0.0 }
 0x1b6   :  { %v221_v39 = vpop.f32.mrb[0].mxu1 }
 0x1b7   :  { %v222_v41 = vadd.f32 %v300_v34, %v221_v39  ;;  %v354_v42 = vpop.f32.mrb[1].mxu1 }
 0x1b9   :  { %260 = vrot.lane.b32.xlu0 %v222_v41, %s392_s19  ;;  %v242_v47 = vsel %vm240_vm4, %v222_v41, 0.0 }
 0x1ba   :  { %v226_v43 = vpop.f32.mrb[2].mxu1  ;;  %v243_v50 = vadd.f32 %v242_v47, %v241_v49 }
 0x1bb   :  { %v227_v44 = vadd.f32 %v300_v34, %v226_v43  ;;  %v357_v45 = vpop.f32.mrb[3].mxu1 }
 0x1bd   :  { %v239_v46 = vsel %vm236_vm3, %v227_v44, 0.0 }
 0x1be   :  { %262 = vrot.lane.b32.xlu1 %v239_v46, %s392_s19  ;;  %v244_v48 = vsel %vm240_vm4, %v239_v46, 0.0 }
 0x1bf   :  { %v245_v51 = vadd.f32 %v244_v48, %v243_v50 }
 0x1e2   :  { %246 = vadd.xlane.f32.xlu1 %v245_v51 }
 0x227   :  { %v259_v52 = vpop.permute.xlu0 %258 }
 0x228   :  { %v268_v55 = vsel %vm267_vm5, %v259_v52, 0.0 }
 0x22b   :  { %v261_v53 = vpop.permute.xlu0 %260 }
 0x22c   :  { %v269_v54 = vsel %vm267_vm5, %v261_v53, 0.0 }
 0x22d   :  { %v270_v56 = vadd.f32 %v269_v54, %v268_v55 }
 0x230   :  { %v263_v57 = vpop.permute.xlu1 %262 }
 0x231   :  { %v271_v58 = vsel %vm267_vm5, %v263_v57, 0.0 }
 0x232   :  { %v272_v59 = vadd.f32 %v271_v58, %v270_v56 }
 0x234   :  { %273 = vadd.xlane.f32.xlu0 %v272_v59 }
 0x26f   :  { %v247_v60 = vpop.xlane.xlu1 %246 }
 0x270   :  { %v248_v61 = vrot.slane %v247_v60, 4 }
 0x272   :  { %v249_v62 = vadd.f32 %v248_v61, %v247_v60 }
 0x274   :  { %v250_v63 = vrot.slane %v249_v62, 2 }
 0x276   :  { %v251_v0 = vadd.f32 %v250_v63, %v249_v62 }
 0x278   :  { %v252_v1 = vrot.slane %v251_v0, 1 }
 0x27a   :  { %v253_v2 = vadd.f32 %v252_v1, %v251_v0 }
 0x27c   :  { %381 = vpush %v253_v2 }
 0x2ad   :  { %s382_s4 = spop %381 }
 0x2c1   :  { %v274_v3 = vpop.xlane.xlu0 %273 }
 0x2c2   :  { %v275_v4 = vrot.slane %v274_v3, 4 }
 0x2c4   :  { %v276_v5 = vadd.f32 %v275_v4, %v274_v3 }
 0x2c6   :  { %v277_v6 = vrot.slane %v276_v5, 2 }
 0x2c8   :  { %v278_v7 = vadd.f32 %v277_v6, %v276_v5 }
 0x2ca   :  { %v279_v8 = vrot.slane %v278_v7, 1 }
 0x2cc   :  { %v280_v9 = vadd.f32 %v279_v8, %v278_v7 }
 0x2ce   :  { %383 = vpush %v280_v9 }
 0x2ff   :  { %s384_s20 = spop %383 }
 0x300   :  { %s282_s21 = smul.f32 8.0, %s384_s20 }
 0x302   :  { %s283_s22 = ssub.f32 %s382_s4, %s282_s21 }
 0x304   :  { %s284_s23 = smul.f32 0.00625, %s283_s22 }
 0x306   :  { %v285_v10 = vstv %s284_s23 }
 0x307   :  { %v286_v11 = vsub.f32 %v217_v37, %v285_v10  ;;  %v287_v12 = vsub.f32 %v222_v41, %v285_v10  ;;  %v288_v13 = vsub.f32 %v227_v44, %v285_v10 }
 0x309   :  { %289 = vst.msk [vmem:[%s497_s5] sm:$0xff] %vm240_vm4, %v286_v11  ;;  %290 = vst.msk [vmem:[%s497_s5 + $0x8] sm:$0xff] %vm240_vm4, %v287_v12 }
 0x30a   :  { %291 = vst.msk [vmem:[%s497_s5 + $0x10] sm:$0xff] %vm240_vm4, %v288_v13 }

</bundles_post_ra>
